<compile_context>
chip_gen: v7x
topology: tpu7x:2x2x1
jax: 0.10.0
libtpu: 0.0.40
codegen_flags: <defaults>
</compile_context>

<pallas_src>
import functools

import jax
import jax.numpy as jnp
from jax.experimental import pallas as pl
from jax.experimental.pallas import tpu as pltpu


def _round_up(x, m):
    return (x + m - 1) // m * m


def _qnet_kernel(x_ref, w1_ref, b1_ref, w2_ref, b2_ref, o_ref):
    # Layer 1: MXU matmul with f32 accumulation; bias add + ReLU on the VPU.
    h = jnp.dot(x_ref[...], w1_ref[...], preferred_element_type=jnp.float32)
    h = jnp.maximum(h + b1_ref[...], 0.0)            # (block_b, hidden), f32
    # Layer 2: second MXU matmul, f32 accumulation, then bias; single store.
    out = jnp.dot(h.astype(w2_ref.dtype), w2_ref[...],
                  preferred_element_type=jnp.float32)
    o_ref[...] = (out + b2_ref[...]).astype(o_ref.dtype)


@functools.partial(jax.jit, static_argnames=("block_b",))
def linear_qnet_forward(x, w1, b1, w2, b2, *, block_b=None):
    """Forward pass of Linear_QNet.

    x : (B, input_size)
    w1: (input_size, hidden_size),  b1: (1, hidden_size)
    w2: (hidden_size, output_size), b2: (1, output_size)
    Returns (B, output_size).
    """
    B, in_size = x.shape
    hidden = w1.shape[1]
    out_size = w2.shape[1]

    # Sublane packing of the streamed/stored dtype (f32: 8 rows per vreg).
    sublane = 8 if x.dtype.itemsize == 4 else 16

    # Batch tiling: one grid step whenever the aligned batch fits a single
    # tile (cap 4096 rows).  A multi-step grid is only worth its ~0.35-0.6 us
    # per-step cost for very large batches; VMEM never forces a smaller tile
    # on v5e/v6e/v7x (see header comment).
    MAX_BLOCK_B = 4096
    if block_b is None:
        block_b = min(MAX_BLOCK_B, _round_up(B, sublane))
    else:
        # Validate explicit block_b against the (8,128) / sublane-packing rule.
        block_b = min(MAX_BLOCK_B, _round_up(int(block_b), sublane))

    # Pad the batch (zero rows) only when needed.  The padded rows produce
    # non-zero garbage (b1 -> ReLU -> W2 + b2) in the padded output region;
    # it is sliced off below and must never be read by callers.
    b_padded = _round_up(B, block_b)
    if b_padded != B:
        x = jnp.pad(x, ((0, b_padded - B), (0, 0)))

    grid = (b_padded // block_b,)

    out = pl.pallas_call(
        _qnet_kernel,
        out_shape=jax.ShapeDtypeStruct((b_padded, out_size), x.dtype),
        grid_spec=pltpu.PrefetchScalarGridSpec(
            num_scalar_prefetch=0,
            grid=grid,
            in_specs=[
                pl.BlockSpec((block_b, in_size), lambda i: (i, 0)),   # x tile
                pl.BlockSpec((in_size, hidden), lambda i: (0, 0)),    # W1 (resident)
                pl.BlockSpec((1, hidden), lambda i: (0, 0)),          # b1
                pl.BlockSpec((hidden, out_size), lambda i: (0, 0)),   # W2 (resident)
                pl.BlockSpec((1, out_size), lambda i: (0, 0)),        # b2
            ],
            # True output width (full-array dim): no 32x HBM write inflation,
            # no post-kernel column slice.
            out_specs=pl.BlockSpec((block_b, out_size), lambda i: (i, 0)),
        ),
        compiler_params=pltpu.CompilerParams(
            dimension_semantics=("parallel",)),
    )(x, w1, b1, w2, b2)

    # Slice away batch padding only if we added any (common case: no-op,
    # so no extra HBM pass).
    if b_padded != B:
        out = out[:B]
    return out


def init_params(key, input_size, hidden_size, output_size, dtype=jnp.float32):
    """Deterministic init matching torch.nn.Linear (uniform +/- 1/sqrt(fan_in)).

    Weights are stored pre-transposed relative to torch's (out, in) layout so
    the kernel computes plain x @ W + b.  No padding is required (and none is
    done) — the kernel consumes the exact logical shapes.
    """
    k1, k2, k3, k4 = jax.random.split(key, 4)
    bound1 = 1.0 / (input_size ** 0.5)
    bound2 = 1.0 / (hidden_size ** 0.5)
    w1 = jax.random.uniform(k1, (input_size, hidden_size), dtype, -bound1, bound1)
    b1 = jax.random.uniform(k2, (1, hidden_size), dtype, -bound1, bound1)
    w2 = jax.random.uniform(k3, (hidden_size, output_size), dtype, -bound2, bound2)
    b2 = jax.random.uniform(k4, (1, output_size), dtype, -bound2, bound2)
    return w1, b1, w2, b2


# TODO(synk): Linear_QNet.save() (torch.save checkpoint I/O) is host-side state
# management with no Pallas equivalent; only the forward pass is implemented.

if __name__ == "__main__":
    key = jax.random.PRNGKey(0)
    input_size, hidden_size, output_size = 16, 32, 4
    batch = 64

    kx, kp = jax.random.split(key)
    x = jax.random.normal(kx, (batch, input_size), jnp.float32)
    w1, b1, w2, b2 = init_params(kp, input_size, hidden_size, output_size)

    # Pure-JAX reference of the forward semantics.
    ref = jnp.maximum(x @ w1 + b1, 0.0) @ w2 + b2

    # Default path: single grid step, no pad, no slice.
    out = jax.block_until_ready(linear_qnet_forward(x, w1, b1, w2, b2))
    assert out.shape == (batch, output_size)
    assert jnp.allclose(out, ref, atol=1e-5, rtol=1e-5)

    # Ragged batch (B not sublane-aligned): exercises the zero-pad + slice path.
    x_odd = x[:13]
    out_odd = jax.block_until_ready(linear_qnet_forward(x_odd, w1, b1, w2, b2))
    assert out_odd.shape == (13, output_size)
    assert jnp.allclose(out_odd, ref[:13], atol=1e-5, rtol=1e-5)

    # Explicit block_b smaller than B: exercises grid > 1 and the block_b
    # validation/round-up path.
    out_tiled = jax.block_until_ready(
        linear_qnet_forward(x, w1, b1, w2, b2, block_b=32))
    assert out_tiled.shape == (batch, output_size)
    assert jnp.allclose(out_tiled, ref, atol=1e-5, rtol=1e-5)

    print("KERNEL_OK")
</pallas_src>

<mosaic_0001>
module attributes {stable_mosaic.version = 11 : i64} {
  func.func @_qnet_kernel(%arg0: i32, %arg1: memref<64x16xf32, #tpu.memory_space<vmem>>, %arg2: memref<16x32xf32, #tpu.memory_space<vmem>>, %arg3: memref<1x32xf32, #tpu.memory_space<vmem>>, %arg4: memref<32x4xf32, #tpu.memory_space<vmem>>, %arg5: memref<1x4xf32, #tpu.memory_space<vmem>>, %arg6: memref<64x4xf32, #tpu.memory_space<vmem>>) attributes {dimension_semantics = [#tpu.dimension_semantics<parallel>], iteration_bounds = array<i64: 1>, scalar_prefetch = 0 : i64, scratch_operands = 0 : i64, tpu.core_type = #tpu.core_type<tc>, window_params = [{transform_indices = @transform_0, window_bounds = array<i64: 64, 16>}, {pipeline_mode = #tpu.pipeline_mode<synchronous>, transform_indices = @transform_1, window_bounds = array<i64: 16, 32>}, {pipeline_mode = #tpu.pipeline_mode<synchronous>, transform_indices = @transform_2, window_bounds = array<i64: 1, 32>}, {pipeline_mode = #tpu.pipeline_mode<synchronous>, transform_indices = @transform_3, window_bounds = array<i64: 32, 4>}, {pipeline_mode = #tpu.pipeline_mode<synchronous>, transform_indices = @transform_4, window_bounds = array<i64: 1, 4>}, {transform_indices = @transform_5, window_bounds = array<i64: 64, 4>}]} {
    %c0 = arith.constant 0 : index
    %c0_0 = arith.constant 0 : index
    %0 = vector.load %arg1[%c0, %c0_0] : memref<64x16xf32, #tpu.memory_space<vmem>>, vector<64x16xf32>
    %c0_1 = arith.constant 0 : index
    %c0_2 = arith.constant 0 : index
    %1 = vector.load %arg2[%c0_1, %c0_2] : memref<16x32xf32, #tpu.memory_space<vmem>>, vector<16x32xf32>
    %cst = arith.constant dense<0.000000e+00> : vector<64x32xf32>
    %2 = tpu.matmul %0, %1, %cst {dimension_numbers = #tpu.dot_dimension_numbers<[1], [0], [0], [1], [0, 0, 1, 1], [], []>} : vector<64x16xf32>, vector<16x32xf32>, vector<64x32xf32> -> vector<64x32xf32>
    %c0_3 = arith.constant 0 : index
    %c0_4 = arith.constant 0 : index
    %3 = vector.load %arg3[%c0_3, %c0_4] : memref<1x32xf32, #tpu.memory_space<vmem>>, vector<1x32xf32>
    %4 = vector.broadcast %3 : vector<1x32xf32> to vector<64x32xf32>
    %5 = arith.addf %2, %4 : vector<64x32xf32>
    %cst_5 = arith.constant 0.000000e+00 : f32
    %6 = vector.broadcast %cst_5 : f32 to vector<64x32xf32>
    %7 = arith.maximumf %5, %6 : vector<64x32xf32>
    %c0_6 = arith.constant 0 : index
    %c0_7 = arith.constant 0 : index
    %8 = vector.load %arg4[%c0_6, %c0_7] : memref<32x4xf32, #tpu.memory_space<vmem>>, vector<32x4xf32>
    %cst_8 = arith.constant dense<0.000000e+00> : vector<64x4xf32>
    %9 = tpu.matmul %7, %8, %cst_8 {dimension_numbers = #tpu.dot_dimension_numbers<[1], [0], [0], [1], [0, 0, 1, 1], [], []>} : vector<64x32xf32>, vector<32x4xf32>, vector<64x4xf32> -> vector<64x4xf32>
    %c0_9 = arith.constant 0 : index
    %c0_10 = arith.constant 0 : index
    %10 = vector.load %arg5[%c0_9, %c0_10] : memref<1x4xf32, #tpu.memory_space<vmem>>, vector<1x4xf32>
    %11 = vector.broadcast %10 : vector<1x4xf32> to vector<64x4xf32>
    %12 = arith.addf %9, %11 : vector<64x4xf32>
    %c0_11 = arith.constant 0 : index
    %c0_12 = arith.constant 0 : index
    %13 = vector.load %arg6[%c0_11, %c0_12] : memref<64x4xf32, #tpu.memory_space<vmem>>, vector<64x4xf32>
    tpu.vector_store %arg6[%c0_11, %c0_12], %12 {strides = array<i32>} : memref<64x4xf32, #tpu.memory_space<vmem>>, vector<64x4xf32>,
    return
  }
  func.func @transform_0(%arg0: i32) -> (i32, i32) {
    %c0_i32 = arith.constant 0 : i32
    %c0_i32_0 = arith.constant 0 : i32
    return %arg0, %c0_i32 : i32, i32
  }
  func.func @transform_1(%arg0: i32) -> (i32, i32) {
    %c0_i32 = arith.constant 0 : i32
    %c0_i32_0 = arith.constant 0 : i32
    %c0_i32_1 = arith.constant 0 : i32
    return %c0_i32, %c0_i32_0 : i32, i32
  }
  func.func @transform_2(%arg0: i32) -> (i32, i32) {
    %c0_i32 = arith.constant 0 : i32
    %c0_i32_0 = arith.constant 0 : i32
    %c0_i32_1 = arith.constant 0 : i32
    return %c0_i32, %c0_i32_0 : i32, i32
  }
  func.func @transform_3(%arg0: i32) -> (i32, i32) {
    %c0_i32 = arith.constant 0 : i32
    %c0_i32_0 = arith.constant 0 : i32
    %c0_i32_1 = arith.constant 0 : i32
    return %c0_i32, %c0_i32_0 : i32, i32
  }
  func.func @transform_4(%arg0: i32) -> (i32, i32) {
    %c0_i32 = arith.constant 0 : i32
    %c0_i32_0 = arith.constant 0 : i32
    %c0_i32_1 = arith.constant 0 : i32
    return %c0_i32, %c0_i32_0 : i32, i32
  }
  func.func @transform_5(%arg0: i32) -> (i32, i32) {
    %c0_i32 = arith.constant 0 : i32
    %c0_i32_0 = arith.constant 0 : i32
    return %arg0, %c0_i32 : i32, i32
  }
}

</mosaic_0001>

<bundles_post_ra>
// kernel: linear_qnet_forward.1
= control target key start
LH: loop header
LB: loop body
LE: loop exit
PB: predicated region body
PF: predicated region fallthrough
CT: control target
= control target key end

     0   :  { %vm37_vm0 = vcmask 130048   ;;  %vm186_vm1 = vcmask 261120   ;;  %vm316_vm2 = vcmask 31744   ;;  %s543_s1 = inlined_call_operand.vmem [shape: f32[16,32], index: 1, kind: input, shape index: {}]   ;;  %s544_s0 = inlined_call_operand.vmem [shape: f32[64,16], index: 0, kind: input, shape index: {}]   ;;  %s545_s3 = inlined_call_operand.vmem [shape: f32[32,4], index: 3, kind: input, shape index: {}]   ;;  %s546_s2 = inlined_call_operand.vmem [shape: f32[1,32], index: 2, kind: input, shape index: {}]   ;;  %s547_s4 = inlined_call_operand.vmem [shape: f32[1,4], index: 4, kind: input, shape index: {}]   ;;  %s548_s5 = inlined_call_operand.vmem [shape: f32[64,4], index: 5, kind: output, shape index: {}]  }
   0x1   :  { %v28_v0 = vld [vmem:[%s543_s1] sm:$0xff]  ;;  %v29_v1 = vld [vmem:[%s543_s1 + $0x8] sm:$0xff]  ;;  %v22_v8 = vld [vmem:[%s544_s0 + $0x10] sm:$0xff] }
   0x2   :  { %v20_v2 = vld [vmem:[%s544_s0] sm:$0xff]  ;;  %v405_v3 = vpack.c.bf16 %v29_v1, %v28_v0  ;;  %v176_v5 = vld [vmem:[%s545_s3 + $0x8] sm:$0xff]  ;;  %v23_v9 = vld [vmem:[%s544_s0 + $0x18] sm:$0xff] }
   0x3   :  { %373 = vmatprep.mubr.msk.f32.mxu0 %vm37_vm0, %v20_v2  ;;  %v175_v4 = vld [vmem:[%s545_s3] sm:$0xff]  ;;  %v21_v6 = vld [vmem:[%s544_s0 + $0x8] sm:$0xff]  ;;  %v26_v12 = vld [vmem:[%s544_s0 + $0x30] sm:$0xff] }
   0x4   :  { %406 = vmatprep.subr.bf16.mxu0 %v405_v3  ;;  %v409_v7 = vpack.c.bf16 %v176_v5, %v175_v4  ;;  %v24_v10 = vld [vmem:[%s544_s0 + $0x20] sm:$0xff]  ;;  %v25_v11 = vld [vmem:[%s544_s0 + $0x28] sm:$0xff]  ;;  %v27_v13 = vld [vmem:[%s544_s0 + $0x38] sm:$0xff] }
   0x5   :  { %408 = vmatpush3.bf16.msra.mxu0 %v405_v3  ;;  %v177_v14 = vld [vmem:[%s545_s3 + $0x10] sm:$0xff]  ;;  %v178_v15 = vld [vmem:[%s545_s3 + $0x18] sm:$0xff]  ;;  %v329_v17 = vld [vmem:[%s546_s2] ss:$0 sm:$0xff] }
   0x6   :  { %410 = vmatprep.subr.bf16.mxu1 %v409_v7  ;;  %v413_v16 = vpack.c.bf16 %v178_v15, %v177_v14  ;;  %v338_v42 = vld [vmem:[%s547_s4] ss:$0 sm:$0xff] }
   0x7   :  { %412 = vmatpush3.bf16.msra.mxu1 %v409_v7 }
   0x8   :  { %374 = vmatmul.mubr.msk.f32.vlgmr.msra.gmra.mrb[0].mxu0 %vm37_vm0, %v21_v6  ;;  %414 = vmatprep.subr.bf16.mxu1 %v413_v16 }
   0x9   :  { %376 = vmatprep.mubr.msk.f32.mxu0 %vm37_vm0, %v22_v8 }
   0xb   :  { %416 = vmatpush3.bf16.msra.mxu1 %v413_v16 }
   0xc   :  { %377 = vmatmul.mubr.msk.f32.gmra.mrb[2].mxu0 %vm37_vm0, %v23_v9 }
   0xd   :  { %379 = vmatprep.mubr.msk.f32.mxu0 %vm37_vm0, %v24_v10 }
  0x10   :  { %380 = vmatmul.mubr.msk.f32.gmra.mrb[4].mxu0 %vm37_vm0, %v25_v11 }
  0x11   :  { %382 = vmatprep.mubr.msk.f32.mxu0 %vm37_vm0, %v26_v12 }
  0x14   :  { %383 = vmatmul.mubr.msk.f32.gmra.mrb[6].mxu0 %vm37_vm0, %v27_v13 }
  0xdb   :  { %v375_v18 = vpop.f32.mrb[0].mxu0 }
  0xdc   :  { %v134_v19 = vadd.f32 %v375_v18, %v329_v17  ;;  %v128_v20 = vpop.f32.mrb[1].mxu0 }
  0xdd   :  { %v129_v21 = vadd.f32 %v329_v17, %v128_v20 }
  0xde   :  { %v168_v24 = vmax.f32 %v134_v19, 0.0 }
  0xdf   :  { %v167_v22 = vmax.f32 %v129_v21, 0.0  ;;  %v378_v23 = vpop.f32.mrb[2].mxu0 }
  0xe0   :  { %v144_v25 = vadd.f32 %v378_v23, %v329_v17  ;;  %v138_v26 = vpop.f32.mrb[3].mxu0 }
  0xe1   :  { %v139_v27 = vadd.f32 %v329_v17, %v138_v26  ;;  %393 = vmatprep.mubr.msk.f32.mxu1 %vm186_vm1, %v167_v22 }
  0xe2   :  { %394 = vmatmul.mubr.msk.f32.vlgmr.msra.gmra.mrb[0].mxu1 %vm186_vm1, %v168_v24  ;;  %v170_v30 = vmax.f32 %v144_v25, 0.0 }
  0xe3   :  { %v169_v28 = vmax.f32 %v139_v27, 0.0  ;;  %v381_v29 = vpop.f32.mrb[4].mxu0 }
  0xe4   :  { %v154_v31 = vadd.f32 %v381_v29, %v329_v17  ;;  %v148_v32 = vpop.f32.mrb[5].mxu0 }
  0xe5   :  { %v149_v33 = vadd.f32 %v329_v17, %v148_v32  ;;  %396 = vmatprep.mubr.msk.f32.mxu1 %vm186_vm1, %v169_v28 }
  0xe6   :  { %397 = vmatmul.mubr.msk.f32.gmra.mrb[2].mxu1 %vm186_vm1, %v170_v30  ;;  %v172_v36 = vmax.f32 %v154_v31, 0.0 }
  0xe7   :  { %v171_v34 = vmax.f32 %v149_v33, 0.0  ;;  %v384_v35 = vpop.f32.mrb[6].mxu0 }
  0xe8   :  { %v164_v37 = vadd.f32 %v384_v35, %v329_v17  ;;  %v158_v38 = vpop.f32.mrb[7].mxu0 }
  0xe9   :  { %v159_v39 = vadd.f32 %v329_v17, %v158_v38  ;;  %399 = vmatprep.mubr.msk.f32.mxu1 %vm186_vm1, %v171_v34 }
  0xea   :  { %400 = vmatmul.mubr.msk.f32.gmra.mrb[4].mxu1 %vm186_vm1, %v172_v36  ;;  %v174_v41 = vmax.f32 %v164_v37, 0.0 }
  0xeb   :  { %v173_v40 = vmax.f32 %v159_v39, 0.0 }
  0xed   :  { %402 = vmatprep.mubr.msk.f32.mxu1 %vm186_vm1, %v173_v40 }
  0xee   :  { %403 = vmatmul.mubr.msk.f32.gmra.mrb[6].mxu1 %vm186_vm1, %v174_v41 }
 0x1b5   :  { %v395_v43 = vpop.f32.mrb[0].mxu1 }
 0x1b6   :  { %v283_v44 = vadd.f32 %v395_v43, %v338_v42  ;;  %v277_v45 = vpop.f32.mrb[1].mxu1 }
 0x1b7   :  { %v278_v46 = vadd.f32 %v338_v42, %v277_v45 }
 0x1b8   :  { %318 = vst.msk [vmem:[%s548_s5 + $0x8] sm:$0xff] %vm316_vm2, %v283_v44 }
 0x1b9   :  { %317 = vst.msk [vmem:[%s548_s5] sm:$0xff] %vm316_vm2, %v278_v46  ;;  %v398_v47 = vpop.f32.mrb[2].mxu1 }
 0x1ba   :  { %v293_v48 = vadd.f32 %v398_v47, %v338_v42  ;;  %v287_v49 = vpop.f32.mrb[3].mxu1 }
 0x1bb   :  { %v288_v50 = vadd.f32 %v338_v42, %v287_v49 }
 0x1bc   :  { %320 = vst.msk [vmem:[%s548_s5 + $0x18] sm:$0xff] %vm316_vm2, %v293_v48 }
 0x1bd   :  { %319 = vst.msk [vmem:[%s548_s5 + $0x10] sm:$0xff] %vm316_vm2, %v288_v50  ;;  %v401_v51 = vpop.f32.mrb[4].mxu1 }
 0x1be   :  { %v303_v52 = vadd.f32 %v401_v51, %v338_v42  ;;  %v297_v53 = vpop.f32.mrb[5].mxu1 }
 0x1bf   :  { %v298_v54 = vadd.f32 %v338_v42, %v297_v53 }
 0x1c0   :  { %322 = vst.msk [vmem:[%s548_s5 + $0x28] sm:$0xff] %vm316_vm2, %v303_v52 }
 0x1c1   :  { %321 = vst.msk [vmem:[%s548_s5 + $0x20] sm:$0xff] %vm316_vm2, %v298_v54  ;;  %v404_v55 = vpop.f32.mrb[6].mxu1 }
 0x1c2   :  { %v313_v56 = vadd.f32 %v404_v55, %v338_v42  ;;  %v307_v57 = vpop.f32.mrb[7].mxu1 }
 0x1c3   :  { %v308_v58 = vadd.f32 %v338_v42, %v307_v57 }
 0x1c4   :  { %324 = vst.msk [vmem:[%s548_s5 + $0x38] sm:$0xff] %vm316_vm2, %v313_v56 }
 0x1c5   :  { %323 = vst.msk [vmem:[%s548_s5 + $0x30] sm:$0xff] %vm316_vm2, %v308_v58 }

</bundles_post_ra>
